<compile_context>
chip_gen: v5e
topology: v5e:2x2
jax: 0.10.0
libtpu: 0.0.40
codegen_flags: <defaults>
</compile_context>

<pallas_src>
import jax
import jax.numpy as jnp
from jax.experimental import pallas as pl
from jax.experimental.pallas import tpu as pltpu


def _make_nconv_kernel(tc):
    """Kernel over one (n, c-tile, l-tile) block.

    x_ref: (tc, V, tL)   a_ref: (W, V)   o_ref: (tc, W, tL)
    out[c, w, l] = sum_v A[w, v] * x[c, v, l]  — one (W,V)@(V,tL) matmul per c-row,
    no transposes / relayouts needed in VMEM.
    """

    def kernel(x_ref, a_ref, o_ref):
        a = a_ref[...]  # (W, V) — loaded once per grid step (resident across inner steps)
        for c in range(tc):  # tc is small & static; unrolled
            o_ref[c] = jnp.dot(
                a, x_ref[c], preferred_element_type=jnp.float32
            ).astype(o_ref.dtype)

    return kernel


def _pick_tiles(N, C, V, L, W, itemsize, vmem_budget=12 * 1024 * 1024):
    """Choose (tc, tl) tiles: VMEM-safe on v5e/v6e/v7x and deep enough to pipeline."""
    # Lane tile over L: full L when small, else a multiple of 128 (<= 1024 lanes;
    # measured throughput plateaus well before that).
    if L <= 256:
        tl = L
    else:
        tl = max(128, min(1024, (L // 128) * 128))

    def vmem_bytes(tc_, tl_):
        # x block + out block, double-buffered by the pipeline, plus A (double-buffered).
        return (2 * (tc_ * V * tl_ + tc_ * W * tl_) + 2 * W * V) * itemsize

    def steps(tc_, tl_):
        return N * (-(-C // tc_)) * (-(-L // tl_))

    tc = C
    # (1) Bound the working set (binding constraint is v5e's 16 MiB scoped default
    #     and v7x's 64 MiB physical VMEM).
    while tc > 1 and vmem_bytes(tc, tl) > vmem_budget:
        tc = (tc + 1) // 2
    while tl > 128 and vmem_bytes(tc, tl) > vmem_budget:
        tl = max(128, ((tl // 2) // 128) * 128)
    # (2) Give the software pipeline / megacore enough grid steps when N is small.
    while tc > 1 and steps(tc, tl) < 8:
        tc = (tc + 1) // 2
    return tc, tl


def nconv(x, A, *, compute_dtype=None, out_dtype=None, min_kernel_bytes=4096):
    """x: (N, C, V, L), A: (N, W, V) -> (N, C, W, L). Matches einsum('ncvl,nwv->ncwl')."""
    N, C, V, L = x.shape
    Na, W, Va = A.shape
    assert Na == N and Va == V, (x.shape, A.shape)

    if compute_dtype is not None:
        # Explicit opt-in: bf16 I/O ~halves HBM traffic on all generations.
        x = x.astype(compute_dtype)
        A = A.astype(compute_dtype)
    elif A.dtype != x.dtype:
        A = A.astype(x.dtype)
    if out_dtype is None:
        out_dtype = x.dtype

    # Tiny problems: the kernel would be pure launch/DMA-descriptor cost.
    if x.size * jnp.dtype(x.dtype).itemsize < min_kernel_bytes:
        return jnp.einsum('ncvl,nwv->ncwl', x, A).astype(out_dtype)

    itemsize = max(jnp.dtype(x.dtype).itemsize, jnp.dtype(out_dtype).itemsize)
    tc, tl = _pick_tiles(N, C, V, L, W, itemsize)

    grid = (N, pl.cdiv(C, tc), pl.cdiv(L, tl))

    cost = pl.CostEstimate(
        flops=2 * N * C * W * V * L,
        transcendentals=0,
        bytes_accessed=(
            x.size * jnp.dtype(x.dtype).itemsize
            + A.size * jnp.dtype(A.dtype).itemsize
            + N * C * W * L * jnp.dtype(out_dtype).itemsize
        ),
    )

    return pl.pallas_call(
        _make_nconv_kernel(tc),
        out_shape=jax.ShapeDtypeStruct((N, C, W, L), out_dtype),
        grid_spec=pl.GridSpec(
            grid=grid,
            in_specs=[
                # x in native NCVL layout; `None` squeezes the batch dim.
                pl.BlockSpec((None, tc, V, tl), lambda n, c, l: (n, c, 0, l)),
                # A block ignores the c/l grid indices -> stays resident, no re-DMA.
                pl.BlockSpec((None, W, V), lambda n, c, l: (n, 0, 0)),
            ],
            out_specs=pl.BlockSpec((None, tc, W, tl), lambda n, c, l: (n, c, 0, l)),
        ),
        compiler_params=pltpu.CompilerParams(
            # No reduction grid axis (V stays untiled) -> everything parallel,
            # so v7x's two TensorCores can shard N x C-tiles x L-tiles.
            dimension_semantics=("parallel", "parallel", "parallel"),
        ),
        cost_estimate=cost,
    )(x, A)


if __name__ == "__main__":
    key = jax.random.PRNGKey(0)
    kx, ka = jax.random.split(key)

    # Case 1: lane-dense path (L a multiple of 128), small shapes.
    N, C, V, L, W = 2, 4, 16, 128, 8
    x = jax.random.normal(kx, (N, C, V, L), dtype=jnp.float32)
    A = jax.random.normal(ka, (N, W, V), dtype=jnp.float32)
    out = jax.block_until_ready(nconv(x, A))
    ref = jnp.einsum('ncvl,nwv->ncwl', x, A)
    assert out.shape == (N, C, W, L), out.shape
    assert jnp.allclose(out, ref, atol=1e-4, rtol=1e-4), "mismatch (f32, L=128)"

    # Case 2: short temporal dim like STPGNN (L=16) — full-L blocks, same kernel.
    kx2, ka2 = jax.random.split(ka)
    N2, C2, V2, L2, W2 = 2, 4, 16, 16, 8
    x2 = jax.random.normal(kx2, (N2, C2, V2, L2), dtype=jnp.float32)
    A2 = jax.random.normal(ka2, (N2, W2, V2), dtype=jnp.float32)
    out2 = jax.block_until_ready(nconv(x2, A2))
    ref2 = jnp.einsum('ncvl,nwv->ncwl', x2, A2)
    assert out2.shape == (N2, C2, W2, L2), out2.shape
    assert jnp.allclose(out2, ref2, atol=1e-4, rtol=1e-4), "mismatch (f32, L=16)"

    # Case 3: bf16 I/O option (halves HBM traffic; f32 accumulation inside).
    out_bf16 = jax.block_until_ready(nconv(x, A, compute_dtype=jnp.bfloat16))
    assert out_bf16.dtype == jnp.bfloat16
    assert jnp.allclose(out_bf16.astype(jnp.float32), ref, atol=0.25, rtol=0.05), \
        "mismatch (bf16)"

    print("KERNEL_OK")
</pallas_src>

<mosaic_0001>
module attributes {stable_mosaic.version = 11 : i64} {
  func.func @kernel(%arg0: i32, %arg1: i32, %arg2: i32, %arg3: memref<1x1x16x128xf32, #tpu.memory_space<vmem>>, %arg4: memref<1x8x16xf32, #tpu.memory_space<vmem>>, %arg5: memref<1x1x8x128xf32, #tpu.memory_space<vmem>>) attributes {dimension_semantics = [#tpu.dimension_semantics<parallel>, #tpu.dimension_semantics<parallel>, #tpu.dimension_semantics<parallel>], iteration_bounds = array<i64: 2, 4, 1>, scalar_prefetch = 0 : i64, scratch_operands = 0 : i64, tpu.core_type = #tpu.core_type<tc>, window_params = [{transform_indices = @transform_0, window_bounds = array<i64: 1, 1, 16, 128>}, {transform_indices = @transform_1, window_bounds = array<i64: 1, 8, 16>}, {transform_indices = @transform_2, window_bounds = array<i64: 1, 1, 8, 128>}]} {
    %c0 = arith.constant 0 : index
    %c0_0 = arith.constant 0 : index
    %c0_1 = arith.constant 0 : index
    %0 = vector.load %arg4[%c0, %c0_0, %c0_1] : memref<1x8x16xf32, #tpu.memory_space<vmem>>, vector<1x8x16xf32>
    %1 = vector.shape_cast %0 : vector<1x8x16xf32> to vector<8x16xf32>
    %c0_2 = arith.constant 0 : index
    %c0_3 = arith.constant 0 : index
    %c0_4 = arith.constant 0 : index
    %c0_5 = arith.constant 0 : index
    %2 = vector.load %arg3[%c0_2, %c0_3, %c0_4, %c0_5] : memref<1x1x16x128xf32, #tpu.memory_space<vmem>>, vector<1x1x16x128xf32>
    %3 = vector.shape_cast %2 : vector<1x1x16x128xf32> to vector<16x128xf32>
    %cst = arith.constant dense<0.000000e+00> : vector<8x128xf32>
    %4 = tpu.matmul %1, %3, %cst {dimension_numbers = #tpu.dot_dimension_numbers<[1], [0], [0], [1], [0, 0, 1, 1], [], []>} : vector<8x16xf32>, vector<16x128xf32>, vector<8x128xf32> -> vector<8x128xf32>
    %c0_6 = arith.constant 0 : index
    %c0_7 = arith.constant 0 : index
    %c0_8 = arith.constant 0 : index
    %c0_9 = arith.constant 0 : index
    %5 = vector.load %arg5[%c0_6, %c0_7, %c0_8, %c0_9] : memref<1x1x8x128xf32, #tpu.memory_space<vmem>>, vector<1x1x8x128xf32>
    %6 = vector.shape_cast %5 : vector<1x1x8x128xf32> to vector<8x128xf32>
    %7 = vector.shape_cast %4 : vector<8x128xf32> to vector<1x1x8x128xf32>
    tpu.vector_store %arg5[%c0_6, %c0_7, %c0_8, %c0_9], %7 {strides = array<i32>} : memref<1x1x8x128xf32, #tpu.memory_space<vmem>>, vector<1x1x8x128xf32>,
    return
  }
  func.func @transform_0(%arg0: i32, %arg1: i32, %arg2: i32) -> (i32, i32, i32, i32) {
    %c0_i32 = arith.constant 0 : i32
    %c0_i32_0 = arith.constant 0 : i32
    return %arg0, %arg1, %c0_i32, %arg2 : i32, i32, i32, i32
  }
  func.func @transform_1(%arg0: i32, %arg1: i32, %arg2: i32) -> (i32, i32, i32) {
    %c0_i32 = arith.constant 0 : i32
    %c0_i32_0 = arith.constant 0 : i32
    %c0_i32_1 = arith.constant 0 : i32
    return %arg0, %c0_i32, %c0_i32_0 : i32, i32, i32
  }
  func.func @transform_2(%arg0: i32, %arg1: i32, %arg2: i32) -> (i32, i32, i32, i32) {
    %c0_i32 = arith.constant 0 : i32
    %c0_i32_0 = arith.constant 0 : i32
    return %arg0, %arg1, %c0_i32, %arg2 : i32, i32, i32, i32
  }
}

</mosaic_0001>

<bundles_post_ra>
// kernel: tpu_custom_call.1
= control target key start
LH: loop header
LB: loop body
LE: loop exit
PB: predicated region body
PF: predicated region fallthrough
CT: control target
= control target key end

     0   :  { %s950_s0 = inlined_call_operand.hbm [shape: f32[2,4,16,128], index: 0, kind: input, shape index: {}]   ;;  %s951_s1 = inlined_call_operand.hbm [shape: f32[2,8,16], index: 1, kind: input, shape index: {}]   ;;  %s952_s2 = inlined_call_operand.hbm [shape: f32[2,4,8,128], index: 2, kind: output, shape index: {}]  }
   0x1   :  { %954 = sst [smem:[#allocation12_spill]] %s950_s0 }
   0x2   :  { %7 = vsyncpa [#allocation3], 0 }
   0x3   :  { %9 = vsyncpa [#allocation3 + $0x1], 0 }
   0x4   :  { %10 = vsyncpa [#allocation6], 0 }
   0x5   :  { %12 = vsyncpa [#allocation6 + $0x1], 0 }
   0x6   :  { %13 = vsyncpa [#allocation4], 0 }
   0x7   :  { %15 = vsyncpa [#allocation4 + $0x1], 0  ;;  %s728_s9 = smov 0   ;;  %s730_s10 = smov 0  }
   0x8   :  { %s732_s11 = smov 0   ;;  %s734_s12 = smov 0  }
   0x9   :  { %s736_s13 = smov 0   ;;  %s738_s14 = smov 0  }
   0xa   :  { %s740_s15 = smov 0   ;;  %s742_s16 = smov 0  }
   0xb   :  { %s744_s17 = smov 0   ;;  %s746_s18 = smov 0  }
   0xc   :  { %s748_s19 = smov 0  }
   0xd LB: > { %s395_s20 = sadd.s32 4294967294, %s709_s19   ;;  %s36_s21 = sadd.s32 1, %s701_s17  ;;  %s709_s19 = sphi %s748_s19, %s21_s19   ;;  %s705_s18 = sphi %s746_s18, %s973_s18   ;;  %s701_s17 = sphi %s744_s17, %s972_s17   ;;  %s697_s16 = sphi %s742_s16, %s971_s16   ;;  %s693_s15 = sphi %s740_s15, %s970_s15   ;;  %s689_s14 = sphi %s738_s14, %s969_s14   ;;  %s685_s13 = sphi %s736_s13, %s968_s13   ;;  %s681_s12 = sphi %s734_s12, %s967_s12   ;;  %s677_s11 = sphi %s732_s11, %s966_s11   ;;  %s673_s10 = sphi %s730_s10, %s965_s10   ;;  %s669_s9 = sphi %s728_s9, %s964_s9  }
   0xe   : > { %p38_p0 = scmp.ge.s32.totalorder %s36_s21, 4  ;;  %s40_s22 = sadd.s32 1, %s705_s18 }
   0xf   : > { %s51_s23 = sadd.s32 1, %s689_s14  ;;  %p58_p1 = scmp.ne.s32.totalorder %s689_s14, %s685_s13 }
  0x10   : > { %s975_s21 = smov (%p38_p0, %s36_s21), 0  ;;  %s977_s22 = smov (!%p38_p0, %s40_s22), %s705_s18 }
  0x11   : > { %s45_s24 = ssub.s32 %s701_s17, %s975_s21  ;;  %p59_p2 = scmp.eq.s32.totalorder %s709_s19, 0 }
  0x12   : > { %p42_p3 = scmp.ge.s32.totalorder %s977_s22, 2  ;;  %p64_p4 = scmp.ne.s32.totalorder %s685_s13, %s681_s12 }
  0x13   : > { %p802_p5 = por %p59_p2, %p58_p1  ;;  %p124_p6 = scmp.eq.s32.totalorder %s395_s20, 7 }
  0x14   : > { %s979_s22 = smov (%p42_p3, %s977_s22), 0  ;;  %p431_p8 = scmp.lt.s32.totalorder %s709_s19, 8 }
  0x15   : > { %956 = sst [smem:[#allocation11_spill]] %s979_s22  ;;  %p811_p7 = por %p124_p6, %p64_p4 }
  0x16   : > { %s817_s27 = ssub.s32 %s705_s18, %s979_s22  ;;  %s144_s29 = sand.u32 1, %s689_s14  }
  0x17   : > { %s46_s28 = sor.u32 %s45_s24, %s817_s27  ;;  %s398_s30 = sshll.u32 %s144_s29, 4 }
  0x18   : > { %p49_p9 = scmp.eq.s32.totalorder %s46_s28, 0  ;;  %s399_s3 = sshll.u32 %s701_s17, 1 }
  0x19   : > { %s400_s5 = sshll.u32 %s705_s18, 3  ;;  %s148_s7 = scalar_lea.vmem [#allocation2], %s398_s30 }
  0x1a   : > { %s824_s4 = scalar_select %p49_p9, %s689_s14, %s51_s23  }
  0x1b   : > { %s154_s6 = sadd.s32 %s400_s5, %s399_s3  ;;  %s159_s8 = sshll.u32 %s148_s7, 4  ;;  %s160_s8 = int_to_ptr.vmem [resolvable:$true] %s159_s8 }
  0x1c   : > { %s401_s20 = sshll.u32 %s154_s6, 3  ;;  %s958_s0 = sld [smem:[#allocation12_spill]] }
  0x1d   : > { %p421_p10 = pnand %p431_p8, %p802_p5  ;;  %p404_p11 = scmp.ge.s32.totalorder %s709_s19, 1 }
  0x1e   : > { %s145_s30 = scalar_lea.sflag [#allocation3], %s144_s29  ;;  %s711_s3 = smov 128  }
  0x1f   : > { %s712_s22 = smov 8   ;;  %p186_p12 = scmp.lt.s32.totalorder %s709_s19, 9 }
  0x20   : > { %s394_s6 = sadd.s32 4294967295, %s709_s19   ;;  %p75_p0 = scmp.eq.s32.totalorder %s817_s27, 0 }
  0x21   : > { %p838_p13 = pnand %p404_p11, %p186_p12  ;;  %p65_p3 = scmp.eq.s32.totalorder %s394_s6, 0 }
  0x22   : > { %s156_s28 = scalar_lea.hbm %s958_s0, %s401_s20  ;;  %s77_s7 = sadd.s32 1, %s677_s11 }
  0x23   : > { %s157_s23 = sshll.u32 %s156_s28, 4  ;;  %p851_p5 = por %p65_p3, %p64_p4  ;;  %s158_s23 = int_to_ptr.hbm [resolvable:$true] %s157_s23 }
  0x24   : > { %423 = dma.hbm_to_vmem [thread:$0]  (!%p421_p10), %s158_s23, 256, %s160_s8, %s145_s30, %s711_s3, %s711_s3, %s712_s22  }
  0x25   : > { %s846_s20 = scalar_select %p75_p0, %s677_s11, %s77_s7  }
  0x26   : > { %p84_p6 = scmp.ne.s32.totalorder %s677_s11, %s673_s10  ;;  %p90_p9 = scmp.ne.s32.totalorder %s673_s10, %s669_s9 }
  0x27   : > { %p118_p10 = scmp.eq.s32.totalorder %s394_s6, 7  ;;  %s169_s8 = sand.u32 1, %s677_s11  }
  0x28   : > { %p860_p11 = por %p90_p9, %p65_p3  ;;  %p86_p0 = por %p84_p6, %p59_p2 }
  0x29   : > { %p867_p12 = por %p118_p10, %p58_p1  ;;  %s402_s28 = sshll.u32 %s169_s8, 3 }
  0x2a   : > { %s177_s3 = scalar_lea.hbm %s951_s1, %s400_s5  ;;  %s173_s22 = scalar_lea.vmem [#allocation5], %s402_s28 }
  0x2b   : > { %s179_s9 = sshll.u32 %s177_s3, 4  ;;  %s181_s6 = sshll.u32 %s173_s22, 4  ;;  %s180_s9 = int_to_ptr.hbm [resolvable:$true] %s179_s9  ;;  %s182_s6 = int_to_ptr.vmem [resolvable:$true] %s181_s6 }
  0x2c   : > { %p424_p4 = pnand %p431_p8, %p86_p0  ;;  %s170_s7 = scalar_lea.sflag [#allocation6], %s169_s8 }
  0x2d   : > { %190 = sbr.rel (%p838_p13) target bundleno = 188 (0xbc), region = 28  ;;  %s883_s0 = sand.u32 (!%p838_p13), 1, %s685_s13  }
  0x2e   : > { %426 = dma.hbm_to_vmem [thread:$0]  (!%p424_p4), %s180_s9, 128, %s182_s6, %s170_s7  }
  0x2f   : > { %s405_s23 = sshll.u32 (!%p838_p13), %s883_s0, 4  ;;  %s193_s5 = scalar_lea.sflag (!%p838_p13), [#allocation3], %s883_s0 }
  0x30   : > { %s196_s30 = scalar_lea.vmem (!%p838_p13), [#allocation2], %s405_s23 }
  0x32   : > { %656 = dma.done.wait (%p851_p5), %s193_s5, 256  }
  0x33   : > { %658 = vsyncadd (%p851_p5), %s193_s5, 4294967040  ;;  %s202_s8 = sand.u32 1, %s673_s10  }
  0x34   : > { %s406_s28 = sshll.u32 %s202_s8, 3  ;;  %s203_s25 = scalar_lea.sflag [#allocation6], %s202_s8 }
  0x35   : > { %s206_s3 = scalar_lea.vmem [#allocation5], %s406_s28 }
  0x36   : > { %660 = dma.done.wait (%p860_p11), %s203_s25, 128  }
  0x37   : > { %662 = vsyncadd (%p860_p11), %s203_s25, 4294967168  ;;  %v235_v0 = vld [vmem:[%s196_s30 + $0x8] sm:$0xff]  ;;  %v234_v1 = vld [vmem:[%s196_s30] sm:$0xff]  ;;  %vm236_vm0 = vcmask 130048   ;;  %s410_s29 = sshll.u32 %s697_s16, 2  ;;  %s407_s22 = sshll.u32 %s883_s0, 3 }
  0x38   : > { %254 = vmatpush.msra.mxu0 %v235_v0  ;;  %v233_v2 = vld [vmem:[%s206_s3] sm:$0xff]  ;;  %s273_s9 = sadd.s32 %s693_s15, %s410_s29  ;;  %s232_s5 = scalar_lea.vmem [#allocation7], %s407_s22 }
  0x39   : > { %s411_s6 = sshll.u32 %s273_s9, 3  ;;  %s277_s8 = sshll.u32 %s232_s5, 4  ;;  %s278_s8 = int_to_ptr.vmem [resolvable:$true] %s277_s8 }
  0x3a   : > { %255 = vmatpush.msra.mxu0 %v234_v1  ;;  %s275_s24 = scalar_lea.hbm %s952_s2, %s411_s6  ;;  %s262_s30 = scalar_lea.sflag [#allocation4], %s883_s0 }
  0x3b   : > { %408 = vmatmul.msk.f32.vlgmr.msra.gmra.mxu0 %vm236_vm0, %v233_v2  ;;  %s279_s28 = sshll.u32 %s275_s24, 4  ;;  %s603_s29 = scalar_lea.hbm %s952_s2, 64  ;;  %s280_s28 = int_to_ptr.hbm [resolvable:$true] %s279_s28 }
  0x3c   : > { %s597_s25 = sshra.s32 %s280_s28, 4  ;;  %s598_s25 = int_to_ptr.hbm [resolvable:$true] %s597_s25 }
  0x3d   : > { %s599_s3 = scalar_lea.hbm %s598_s25, 8  ;;  %p604_p13 = scmp.lt.s32.totalorder %s598_s25, %s952_s2 }
  0x3e   : > { %p600_p1 = scmp.ne.s32.totalorder %s598_s25, %s599_s3  ;;  %p605_p3 = scmp.lt.s32.totalorder %s603_s29, %s599_s3 }
  0x40   : > { %p601_p2 = pnand %p600_p1, %p867_p12  ;;  %p606_p5 = por %p605_p3, %p604_p13 }
  0x42   : > { %p602_p8 = pneg %p601_p2 }
  0x44   : > { %p607_p6 = pnand %p606_p5, %p602_p8 }
  0xb8   : > { %v257_v3 = vpop.f32.mrf.mxu0 }
  0xb9   : > { %260 = vst [vmem:[%s232_s5] sm:$0xff] %v257_v3 }
  0xba   : > { %610 = shalt.err (!%p607_p6)
}
  0xbb   : > { %418 = dma.vmem_to_hbm [thread:$0]  (%p867_p12), %s278_s8, 128, %s280_s28, %s262_s30  }
  0xbc PF: > { %p432_p9 = scmp.ge.s32.totalorder %s709_s19, 2  ;;  %s291_s0 = sand.u32 1, %s681_s12  }
  0xbd   : > { %s292_s6 = scalar_lea.sflag [#allocation4], %s291_s0 }
  0xbe   : > { %p428_p10 = pnand %p432_p9, %p811_p7 }
  0xc0   : > { %p429_p11 = pneg %p428_p10 }
  0xc2   : > { %664 = dma.done.wait (%p429_p11), %s292_s6, 128  }
  0xc3   : > { %666 = vsyncadd (%p429_p11), %s292_s6, 4294967168  ;;  %s21_s19 = sadd.s32 1, %s709_s19   ;;  %s963_s27 = sld [smem:[#allocation11_spill]] }
  0xc4   : > { %p18_p0 = scmp.ge.s32.totalorder %s21_s19, 10   ;;  %s964_s9 = smov %s673_s10 }
  0xc5   : > { %s965_s10 = smov %s677_s11  ;;  %s966_s11 = smov %s846_s20 }
  0xc6   : > { %s967_s12 = smov %s685_s13  ;;  %s968_s13 = smov %s689_s14 }
  0xc7   : > { %s969_s14 = smov %s824_s4  ;;  %s970_s15 = smov %s701_s17 }
  0xc8   : > { %s971_s16 = smov %s705_s18  ;;  %s972_s17 = smov %s975_s21 }
  0xc9   : > { %s973_s18 = smov %s963_s27  ;;  %20 = sbr.rel (!%p18_p0) target bundleno = 13 (0xd), region = 86 }
  0xce   :  { %298 = vsyncpa [#allocation3], 1 }
  0xcf   :  { %300 = vsyncpa [#allocation3 + $0x1], 1 }
  0xd0   :  { %301 = vsyncpa [#allocation6], 1 }
  0xd1   :  { %303 = vsyncpa [#allocation6 + $0x1], 1 }
  0xd2   :  { %304 = vsyncpa [#allocation4], 1 }
  0xd3   :  { %306 = vsyncpa [#allocation4 + $0x1], 1 }

</bundles_post_ra>
